<compile_context>
chip_gen: v6e
topology: v6e:2x2x1
jax: 0.10.0
libtpu: 0.0.40
codegen_flags: <defaults>
</compile_context>

<pallas_src>
import math

import numpy as np
import jax
import jax.numpy as jnp
from jax.experimental import pallas as pl
from jax.experimental.pallas import tpu as pltpu

# ---- NeuroScribe.__init__ defaults -----------------------------------------
N_BASIS    = 5                                   # N
STATE_DIM  = 1                                   # len(state_index)
T_PARAM    = 10                                  # T
L_PARAM    = 10                                  # l
TAU        = 1.0
DT         = 1.0 / (T_PARAM * L_PARAM)           # 0.01
TIME_STEPS = int(round(TAU / DT)) + 1            # 101
T_PAD      = 128                                 # time axis padded lane-dense
A_X        = 1.0
A_Z        = 25.0
N_CLASSES  = 404                                 # MergedModel(n_classes=404)
N_CHANNELS = 5
WINDOW     = 384
DY0        = 0.01                                # dy0 = zeros_like(y0) + 0.01

# Folded-feature lane layout: [goal, w0..w4, s, pad]
NF         = 8                                   # folded feature lanes
S_COL      = STATE_DIM + N_BASIS                 # lane 6 holds s
# DMP-constant table rows (shape (16, T_PAD)):
#   rows 1..5 : basis impulse response FG (matmul matrix, other rows zero)
#   row 8     : 1 - A     row 9 : A     row 10 : z0 * B
ROW_1MA    = 8
ROW_A      = 9
ROW_Z0B    = 10
CONST_ROWS = 16


# -----------------------------------------------------------------------------
# Trace-time constants: forcing basis folded with the linear-recurrence
# impulse response of the Euler DMP integrator.
def _dmp_constants():
    T = TIME_STEPS
    d = DT / TAU
    # Euler phase variable: x_{i+1} = x_i + (-A_X * x_i / TAU) * DT,  x_0 = 1.
    x = (1.0 - A_X * d) ** np.arange(T)                                    # (T,)
    # DMPParameters: Gaussian basis centers / widths.
    c = np.exp(-A_X * np.linspace(0.0, 1.0, N_BASIS))                      # (N,)
    sigma2 = (N_BASIS ** 1.5) / c / A_X
    psi = np.exp(-0.5 * (x[None, :] - c[:, None]) ** 2 / sigma2[:, None])  # (N,T)
    F = psi * x[None, :] / psi.sum(axis=0, keepdims=True)                  # (N,T)

    # Euler recurrence on u = [y - goal, z]:  u_{t+1} = M u_t + [0, d * fx_t]
    b_z = A_Z / 4.0
    M = np.array([[1.0,              d],
                  [-A_Z * b_z * d,   1.0 - A_Z * d]], dtype=np.float64)
    A = np.zeros(T)       # (M^t)[0,0]
    B = np.zeros(T)       # (M^t)[0,1]
    powers01 = np.zeros(T)
    P = np.eye(2)
    for t in range(T):
        A[t] = P[0, 0]
        B[t] = P[0, 1]
        powers01[t] = P[0, 1]
        P = M @ P
    # G[t,k] = d * (M^{t-1-k})[0,1]  for k < t (impulse response of the forcing)
    G = np.zeros((T, T))
    for t in range(T):
        for k in range(t):
            G[t, k] = d * powers01[t - 1 - k]
    FG = F @ G.T                                                           # (N,T)

    const = np.zeros((CONST_ROWS, T_PAD), dtype=np.float64)
    const[STATE_DIM:STATE_DIM + N_BASIS, :T] = FG      # aligned with feat lanes 1..5
    const[ROW_1MA, :T] = 1.0 - A
    const[ROW_A,   :T] = A
    const[ROW_Z0B, :T] = (DY0 * TAU) * B               # z0 = dy0 * TAU contribution
    return const.astype(np.float32)                    # (16, 128)


# -----------------------------------------------------------------------------
# Fused kernel: folded encoder matmul -> closed-form DMP trajectory, all VMEM.
def _neuroscribe_kernel(x_ref, w_ref, b_ref, y0_ref, const_ref, o_ref):
    # Folded encoder: feat = x @ W_small + b_small   -> (TB, 8) f32
    # lanes: [goal, w0..w4, s, 0]
    feat = jnp.dot(x_ref[...], w_ref[...],
                   preferred_element_type=jnp.float32) + b_ref[...]

    goal = feat[:, 0:STATE_DIM]                                           # (TB,1)
    s    = feat[:, S_COL:S_COL + 1]                                       # (TB,1)
    y0   = y0_ref[...]                                                    # (TB,1)
    # TODO(synk): `s=` semantics of the custom DMPIntegrator unknown; applied
    # as a per-sample scale of the forcing term (unchanged from prior version).
    scale = s * (goal - y0)                                               # (TB,1)

    const = const_ref[...]                                                # (16,128)

    # Forcing contribution: one tiny MXU dot replaces 5 lane extracts/FMAs.
    forced = jnp.dot(feat, const[0:NF, :],
                     preferred_element_type=jnp.float32)                  # (TB,128)

    # Closed-form Euler rollout (identical to the sequential recurrence).
    y = (goal * const[ROW_1MA:ROW_1MA + 1, :]
         + y0 * const[ROW_A:ROW_A + 1, :]
         + const[ROW_Z0B:ROW_Z0B + 1, :]
         + scale * forced)                                                # (TB,128)
    o_ref[...] = y


def _pick_batch_tile(B):
    if B <= 512:
        return B
    for tb in (512, 256, 128, 64, 32, 16, 8):
        if B % tb == 0:
            return tb
    return B


def _run_fused(x_flat, w, b, y0_col, const):
    B, K = x_flat.shape
    TB = _pick_batch_tile(B)
    grid = (B // TB,)

    cost = pl.CostEstimate(
        flops=2 * B * K * NF + 2 * B * NF * T_PAD,
        transcendentals=0,
        bytes_accessed=int(x_flat.size * 4 + w.size * 4 + b.size * 4
                           + y0_col.size * 4 + const.size * 4 + B * T_PAD * 4),
    )

    return pl.pallas_call(
        _neuroscribe_kernel,
        out_shape=jax.ShapeDtypeStruct((B, T_PAD), jnp.float32),
        grid_spec=pltpu.PrefetchScalarGridSpec(
            num_scalar_prefetch=0,
            grid=grid,
            in_specs=[
                pl.BlockSpec((TB, K), lambda i: (i, 0)),            # activations
                pl.BlockSpec((K, NF), lambda i: (0, 0)),            # folded weight (resident)
                pl.BlockSpec((1, NF), lambda i: (0, 0)),            # folded bias   (resident)
                pl.BlockSpec((TB, 1), lambda i: (i, 0)),            # y0
                pl.BlockSpec((CONST_ROWS, T_PAD), lambda i: (0, 0)),  # DMP constants (resident)
            ],
            out_specs=pl.BlockSpec((TB, T_PAD), lambda i: (i, 0)),
        ),
        compiler_params=pltpu.CompilerParams(
            dimension_semantics=("parallel",),
            vmem_limit_bytes=32 * 1024 * 1024,
        ),
        cost_estimate=cost,
    )(x_flat, w, b, y0_col, const)


# -----------------------------------------------------------------------------
def init_params(key):
    k1, k2 = jax.random.split(key)
    fan_in = N_CHANNELS * WINDOW                         # 1920
    # TODO(synk): MergedModel/TSFEEGNet architecture unavailable; approximated
    # by a single dense projection to n_classes=404 (hot path is this matmul).
    wf = jax.random.uniform(k1, (fan_in, N_CLASSES), jnp.float32,
                            -1.0 / math.sqrt(fan_in), 1.0 / math.sqrt(fan_in))
    bf = jnp.full((1, N_CLASSES), 0.1, jnp.float32)
    wl = jax.random.uniform(k2, (1, N_CLASSES), jnp.float32,
                            -1.0 / math.sqrt(N_CLASSES), 1.0 / math.sqrt(N_CLASSES))
    bl = jnp.zeros((1, 1), jnp.float32)

    # Fold the Linear(404 -> 1) head and the 398 feature columns that are only
    # consumed through `s` into the encoder weight (exact while the encoder
    # stand-in is a pure linear projection):
    n_keep = STATE_DIM + N_BASIS                          # 6 DMP-parameter lanes
    w_small = jnp.concatenate([wf[:, :n_keep], wf @ wl.T], axis=1)        # (1920,7)
    w_small = jnp.pad(w_small, ((0, 0), (0, NF - (n_keep + 1))))          # (1920,8)
    b_small = jnp.concatenate([bf[:, :n_keep], bf @ wl.T + bl], axis=1)   # (1,7)
    b_small = jnp.pad(b_small, ((0, 0), (0, NF - (n_keep + 1))))          # (1,8)

    return dict(
        w=w_small,                                # f32: folded weight is only ~60 KiB
        b=b_small,
        const=jnp.asarray(_dmp_constants()),      # (16, 128) f32
    )


@jax.jit
def neuroscribe_forward(params, x, y0):
    B = x.shape[0]
    x_flat = x.reshape(B, -1).astype(jnp.float32)              # contiguous view, no cast needed
    y0_col = y0.reshape(B * STATE_DIM, 1).astype(jnp.float32)

    Y = _run_fused(x_flat, params["w"], params["b"], y0_col, params["const"])  # (B, 128)

    # y.view(B, len(state_index), -1).transpose(2, 1)
    y = Y[:, :TIME_STEPS].reshape(B, STATE_DIM, TIME_STEPS)
    return jnp.transpose(y, (0, 2, 1))                          # (B, T, 1)


if __name__ == "__main__":
    key = jax.random.PRNGKey(0)
    pkey, xkey, ykey = jax.random.split(key, 3)
    params = init_params(pkey)

    x = jax.random.normal(xkey, (2, N_CHANNELS, WINDOW), jnp.float32)  # EEG batch
    y0 = jax.random.normal(ykey, (2, STATE_DIM), jnp.float32)          # start states

    out = neuroscribe_forward(params, x, y0)
    out = jax.block_until_ready(out)

    assert out.shape == (2, TIME_STEPS, STATE_DIM), out.shape
    assert bool(jnp.all(jnp.isfinite(out)))
    print("KERNEL_OK")
</pallas_src>

<mosaic_0001>
module attributes {stable_mosaic.version = 11 : i64} {
  func.func @_neuroscribe_kernel(%arg0: i32, %arg1: memref<2x1920xf32, #tpu.memory_space<vmem>>, %arg2: memref<1920x8xf32, #tpu.memory_space<vmem>>, %arg3: memref<1x8xf32, #tpu.memory_space<vmem>>, %arg4: memref<2x1xf32, #tpu.memory_space<vmem>>, %arg5: memref<16x128xf32, #tpu.memory_space<vmem>>, %arg6: memref<2x128xf32, #tpu.memory_space<vmem>>) attributes {dimension_semantics = [#tpu.dimension_semantics<parallel>], iteration_bounds = array<i64: 1>, scalar_prefetch = 0 : i64, scratch_operands = 0 : i64, tpu.core_type = #tpu.core_type<tc>, window_params = [{transform_indices = @transform_0, window_bounds = array<i64: 2, 1920>}, {pipeline_mode = #tpu.pipeline_mode<synchronous>, transform_indices = @transform_1, window_bounds = array<i64: 1920, 8>}, {pipeline_mode = #tpu.pipeline_mode<synchronous>, transform_indices = @transform_2, window_bounds = array<i64: 1, 8>}, {transform_indices = @transform_3, window_bounds = array<i64: 2, 1>}, {pipeline_mode = #tpu.pipeline_mode<synchronous>, transform_indices = @transform_4, window_bounds = array<i64: 16, 128>}, {transform_indices = @transform_5, window_bounds = array<i64: 2, 128>}]} {
    %c0 = arith.constant 0 : index
    %c0_0 = arith.constant 0 : index
    %0 = vector.load %arg1[%c0, %c0_0] : memref<2x1920xf32, #tpu.memory_space<vmem>>, vector<2x1920xf32>
    %c0_1 = arith.constant 0 : index
    %c0_2 = arith.constant 0 : index
    %1 = vector.load %arg2[%c0_1, %c0_2] : memref<1920x8xf32, #tpu.memory_space<vmem>>, vector<1920x8xf32>
    %cst = arith.constant dense<0.000000e+00> : vector<2x8xf32>
    %2 = tpu.matmul %0, %1, %cst {dimension_numbers = #tpu.dot_dimension_numbers<[1], [0], [0], [1], [0, 0, 1, 1], [], []>} : vector<2x1920xf32>, vector<1920x8xf32>, vector<2x8xf32> -> vector<2x8xf32>
    %c0_3 = arith.constant 0 : index
    %c0_4 = arith.constant 0 : index
    %3 = vector.load %arg3[%c0_3, %c0_4] : memref<1x8xf32, #tpu.memory_space<vmem>>, vector<1x8xf32>
    %4 = vector.broadcast %3 : vector<1x8xf32> to vector<2x8xf32>
    %5 = arith.addf %2, %4 : vector<2x8xf32>
    %6 = vector.extract_strided_slice %5 {offsets = [0, 0], sizes = [2, 1], strides = [1, 1]} : vector<2x8xf32> to vector<2x1xf32>
    %7 = vector.extract_strided_slice %5 {offsets = [0, 6], sizes = [2, 1], strides = [1, 1]} : vector<2x8xf32> to vector<2x1xf32>
    %c0_5 = arith.constant 0 : index
    %c0_6 = arith.constant 0 : index
    %8 = vector.load %arg4[%c0_5, %c0_6] : memref<2x1xf32, #tpu.memory_space<vmem>>, vector<2x1xf32>
    %9 = arith.subf %6, %8 : vector<2x1xf32>
    %10 = arith.mulf %7, %9 : vector<2x1xf32>
    %c0_7 = arith.constant 0 : index
    %c0_8 = arith.constant 0 : index
    %11 = vector.load %arg5[%c0_7, %c0_8] : memref<16x128xf32, #tpu.memory_space<vmem>>, vector<16x128xf32>
    %12 = vector.extract_strided_slice %11 {offsets = [0, 0], sizes = [8, 128], strides = [1, 1]} : vector<16x128xf32> to vector<8x128xf32>
    %cst_9 = arith.constant dense<0.000000e+00> : vector<2x128xf32>
    %13 = tpu.matmul %5, %12, %cst_9 {dimension_numbers = #tpu.dot_dimension_numbers<[1], [0], [0], [1], [0, 0, 1, 1], [], []>} : vector<2x8xf32>, vector<8x128xf32>, vector<2x128xf32> -> vector<2x128xf32>
    %14 = vector.extract_strided_slice %11 {offsets = [8, 0], sizes = [1, 128], strides = [1, 1]} : vector<16x128xf32> to vector<1x128xf32>
    %15 = vector.broadcast %6 : vector<2x1xf32> to vector<2x128xf32>
    %16 = vector.broadcast %14 : vector<1x128xf32> to vector<2x128xf32>
    %17 = arith.mulf %15, %16 : vector<2x128xf32>
    %18 = vector.extract_strided_slice %11 {offsets = [9, 0], sizes = [1, 128], strides = [1, 1]} : vector<16x128xf32> to vector<1x128xf32>
    %19 = vector.broadcast %8 : vector<2x1xf32> to vector<2x128xf32>
    %20 = vector.broadcast %18 : vector<1x128xf32> to vector<2x128xf32>
    %21 = arith.mulf %19, %20 : vector<2x128xf32>
    %22 = arith.addf %17, %21 : vector<2x128xf32>
    %23 = vector.extract_strided_slice %11 {offsets = [10, 0], sizes = [1, 128], strides = [1, 1]} : vector<16x128xf32> to vector<1x128xf32>
    %24 = vector.broadcast %23 : vector<1x128xf32> to vector<2x128xf32>
    %25 = arith.addf %22, %24 : vector<2x128xf32>
    %26 = vector.broadcast %10 : vector<2x1xf32> to vector<2x128xf32>
    %27 = arith.mulf %26, %13 : vector<2x128xf32>
    %28 = arith.addf %25, %27 : vector<2x128xf32>
    %c0_10 = arith.constant 0 : index
    %c0_11 = arith.constant 0 : index
    %29 = vector.load %arg6[%c0_10, %c0_11] : memref<2x128xf32, #tpu.memory_space<vmem>>, vector<2x128xf32>
    tpu.vector_store %arg6[%c0_10, %c0_11], %28 {strides = array<i32>} : memref<2x128xf32, #tpu.memory_space<vmem>>, vector<2x128xf32>,
    return
  }
  func.func @transform_0(%arg0: i32) -> (i32, i32) {
    %c0_i32 = arith.constant 0 : i32
    %c0_i32_0 = arith.constant 0 : i32
    return %arg0, %c0_i32 : i32, i32
  }
  func.func @transform_1(%arg0: i32) -> (i32, i32) {
    %c0_i32 = arith.constant 0 : i32
    %c0_i32_0 = arith.constant 0 : i32
    %c0_i32_1 = arith.constant 0 : i32
    return %c0_i32, %c0_i32_0 : i32, i32
  }
  func.func @transform_2(%arg0: i32) -> (i32, i32) {
    %c0_i32 = arith.constant 0 : i32
    %c0_i32_0 = arith.constant 0 : i32
    %c0_i32_1 = arith.constant 0 : i32
    return %c0_i32, %c0_i32_0 : i32, i32
  }
  func.func @transform_3(%arg0: i32) -> (i32, i32) {
    %c0_i32 = arith.constant 0 : i32
    %c0_i32_0 = arith.constant 0 : i32
    return %arg0, %c0_i32 : i32, i32
  }
  func.func @transform_4(%arg0: i32) -> (i32, i32) {
    %c0_i32 = arith.constant 0 : i32
    %c0_i32_0 = arith.constant 0 : i32
    %c0_i32_1 = arith.constant 0 : i32
    return %c0_i32, %c0_i32_0 : i32, i32
  }
  func.func @transform_5(%arg0: i32) -> (i32, i32) {
    %c0_i32 = arith.constant 0 : i32
    %c0_i32_0 = arith.constant 0 : i32
    return %arg0, %c0_i32 : i32, i32
  }
}

</mosaic_0001>

<bundles_post_ra>
// kernel: neuroscribe_forward.1
= control target key start
LH: loop header
LB: loop body
LE: loop exit
PB: predicated region body
PF: predicated region fallthrough
CT: control target
= control target key end

     0   :  { %v1391_v27 = vmov 1983009808   ;;  %v280_v29 = vlaneseq  ;;  %s2210_s0 = inlined_call_operand.vmem [shape: f32[2,1920], index: 0, kind: input, shape index: {}]   ;;  %s2211_s1 = inlined_call_operand.vmem [shape: f32[1920,8], index: 1, kind: input, shape index: {}]   ;;  %s2212_s2 = inlined_call_operand.vmem [shape: f32[1,8], index: 2, kind: input, shape index: {}]   ;;  %s2213_s3 = inlined_call_operand.vmem [shape: f32[2,1], index: 3, kind: input, shape index: {}]   ;;  %s2214_s4 = inlined_call_operand.vmem [shape: f32[16,128], index: 4, kind: input, shape index: {}]   ;;  %s2215_s5 = inlined_call_operand.hbm [shape: f32[2,128], index: 5, kind: output, shape index: {}]  }
   0x1   :  { %v56_v0 = vld [vmem:[%s2211_s1 + $0xf8] sm:$0xff]  ;;  %v55_v2 = vld [vmem:[%s2211_s1 + $0xf0] sm:$0xff]  ;;  %v54_v6 = vld [vmem:[%s2211_s1 + $0xe8] sm:$0xff]  ;;  %v278_v28 = vunpack.c.l.s4 %v1391_v27 }
   0x2   :  { %v40_v1 = vld [vmem:[%s2211_s1 + $0x78] sm:$0xff]  ;;  %1050 = vmatprep.subr.mxu0 %v56_v0  ;;  %v39_v4 = vld [vmem:[%s2211_s1 + $0x70] sm:$0xff]  ;;  %v38_v8 = vld [vmem:[%s2211_s1 + $0x68] sm:$0xff]  ;;  %v1533_v39 = vshrl.u32 %v280_v29, 7 }
   0x3   :  { %v88_v3 = vld [vmem:[%s2211_s1 + $0x1f8] sm:$0xff]  ;;  %1051 = vmatpush3.msra.mxu0 %v40_v1  ;;  %v87_v7 = vld [vmem:[%s2211_s1 + $0x1f0] sm:$0xff]  ;;  %v86_v10 = vld [vmem:[%s2211_s1 + $0x1e8] sm:$0xff]  ;;  %v279_v38 = vunpack.c.0.s8 %v278_v28 }
   0x4   :  { %v72_v5 = vld [vmem:[%s2211_s1 + $0x178] sm:$0xff]  ;;  %1085 = vmatprep.subr.mxu1 %v88_v3  ;;  %1052 = vmatprep.subr.mxu0 %v55_v2  ;;  %v71_v9 = vld [vmem:[%s2211_s1 + $0x170] sm:$0xff]  ;;  %v53_v11 = vld [vmem:[%s2211_s1 + $0xe0] sm:$0xff] }
   0x5   :  { %1086 = vmatpush3.msra.mxu1 %v72_v5  ;;  %1053 = vmatpush3.msra.mxu0 %v39_v4  ;;  %v70_v12 = vld [vmem:[%s2211_s1 + $0x168] sm:$0xff]  ;;  %v37_v13 = vld [vmem:[%s2211_s1 + $0x60] sm:$0xff]  ;;  %v52_v15 = vld [vmem:[%s2211_s1 + $0xd8] sm:$0xff]  ;;  %v1560_v48 = vsub.s32 %v279_v38, %v1533_v39 }
   0x6   :  { %1087 = vmatprep.subr.mxu1 %v87_v7  ;;  %1054 = vmatprep.subr.mxu0 %v54_v6  ;;  %v85_v14 = vld [vmem:[%s2211_s1 + $0x1e0] sm:$0xff]  ;;  %v36_v17 = vld [vmem:[%s2211_s1 + $0x58] sm:$0xff]  ;;  %v51_v19 = vld [vmem:[%s2211_s1 + $0xd0] sm:$0xff] }
   0x7   :  { %1088 = vmatpush3.msra.mxu1 %v71_v9  ;;  %1055 = vmatpush3.msra.mxu0 %v38_v8  ;;  %v69_v16 = vld [vmem:[%s2211_s1 + $0x160] sm:$0xff]  ;;  %v84_v18 = vld [vmem:[%s2211_s1 + $0x1d8] sm:$0xff]  ;;  %v35_v21 = vld [vmem:[%s2211_s1 + $0x50] sm:$0xff] }
   0x8   :  { %1089 = vmatprep.subr.mxu1 %v86_v10  ;;  %1056 = vmatprep.subr.mxu0 %v53_v11  ;;  %v68_v20 = vld [vmem:[%s2211_s1 + $0x158] sm:$0xff]  ;;  %v83_v22 = vld [vmem:[%s2211_s1 + $0x1d0] sm:$0xff]  ;;  %v50_v23 = vld [vmem:[%s2211_s1 + $0xc8] sm:$0xff] }
   0x9   :  { %1090 = vmatpush3.msra.mxu1 %v70_v12  ;;  %1057 = vmatpush3.msra.mxu0 %v37_v13  ;;  %v67_v24 = vld [vmem:[%s2211_s1 + $0x150] sm:$0xff]  ;;  %v34_v25 = vld [vmem:[%s2211_s1 + $0x48] sm:$0xff]  ;;  %v49_v30 = vld [vmem:[%s2211_s1 + $0xc0] sm:$0xff] }
   0xa   :  { %1091 = vmatprep.subr.mxu1 %v85_v14  ;;  %1058 = vmatprep.subr.mxu0 %v52_v15  ;;  %v82_v26 = vld [vmem:[%s2211_s1 + $0x1c8] sm:$0xff]  ;;  %v33_v32 = vld [vmem:[%s2211_s1 + $0x40] sm:$0xff]  ;;  %v48_v34 = vld [vmem:[%s2211_s1 + $0xb8] sm:$0xff] }
   0xb   :  { %1092 = vmatpush3.msra.mxu1 %v69_v16  ;;  %1059 = vmatpush3.msra.mxu0 %v36_v17  ;;  %v66_v31 = vld [vmem:[%s2211_s1 + $0x148] sm:$0xff]  ;;  %v81_v33 = vld [vmem:[%s2211_s1 + $0x1c0] sm:$0xff]  ;;  %v32_v36 = vld [vmem:[%s2211_s1 + $0x38] sm:$0xff] }
   0xc   :  { %1093 = vmatprep.subr.mxu1 %v84_v18  ;;  %1060 = vmatprep.subr.mxu0 %v51_v19  ;;  %v65_v35 = vld [vmem:[%s2211_s1 + $0x140] sm:$0xff]  ;;  %v80_v37 = vld [vmem:[%s2211_s1 + $0x1b8] sm:$0xff]  ;;  %v47_v40 = vld [vmem:[%s2211_s1 + $0xb0] sm:$0xff] }
   0xd   :  { %1094 = vmatpush3.msra.mxu1 %v68_v20  ;;  %1061 = vmatpush3.msra.mxu0 %v35_v21  ;;  %v64_v41 = vld [vmem:[%s2211_s1 + $0x138] sm:$0xff]  ;;  %v31_v42 = vld [vmem:[%s2211_s1 + $0x30] sm:$0xff]  ;;  %v46_v44 = vld [vmem:[%s2211_s1 + $0xa8] sm:$0xff] }
   0xe   :  { %1095 = vmatprep.subr.mxu1 %v83_v22  ;;  %1062 = vmatprep.subr.mxu0 %v50_v23  ;;  %v79_v43 = vld [vmem:[%s2211_s1 + $0x1b0] sm:$0xff]  ;;  %v30_v46 = vld [vmem:[%s2211_s1 + $0x28] sm:$0xff]  ;;  %v45_v49 = vld [vmem:[%s2211_s1 + $0xa0] sm:$0xff] }
   0xf   :  { %1096 = vmatpush3.msra.mxu1 %v67_v24  ;;  %1063 = vmatpush3.msra.mxu0 %v34_v25  ;;  %v63_v45 = vld [vmem:[%s2211_s1 + $0x130] sm:$0xff]  ;;  %v78_v47 = vld [vmem:[%s2211_s1 + $0x1a8] sm:$0xff]  ;;  %v21_v51 = vld [vmem:[%s2210_s0] sm:$0xff] }
  0x10   :  { %1097 = vmatprep.subr.mxu1 %v82_v26  ;;  %1064 = vmatprep.subr.mxu0 %v49_v30  ;;  %v62_v50 = vld [vmem:[%s2211_s1 + $0x128] sm:$0xff]  ;;  %v29_v52 = vld [vmem:[%s2211_s1 + $0x20] sm:$0xff]  ;;  %v44_v54 = vld [vmem:[%s2211_s1 + $0x98] sm:$0xff]  ;;  %v283_v58 = vrot.slane %v21_v51, %v1560_v48  ;;  %v276_v59 = vcombine.high %v21_v51, %v21_v51 }
  0x11   :  { %1098 = vmatpush3.msra.mxu1 %v66_v31  ;;  %1065 = vmatpush3.msra.mxu0 %v33_v32  ;;  %v77_v53 = vld [vmem:[%s2211_s1 + $0x1a0] sm:$0xff]  ;;  %v28_v56 = vld [vmem:[%s2211_s1 + $0x18] sm:$0xff]  ;;  %v43_v60 = vld [vmem:[%s2211_s1 + $0x90] sm:$0xff] }
  0x12   :  { %1099 = vmatprep.subr.mxu1 %v81_v33  ;;  %1066 = vmatprep.subr.mxu0 %v48_v34  ;;  %v61_v55 = vld [vmem:[%s2211_s1 + $0x120] sm:$0xff]  ;;  %v76_v57 = vld [vmem:[%s2211_s1 + $0x198] sm:$0xff]  ;;  %v27_v62 = vld [vmem:[%s2211_s1 + $0x10] sm:$0xff]  ;;  %v291_v4 = vcombine.high %v283_v58, %v283_v58  ;;  %v290_v5 = vrot.slane %v276_v59, %v1560_v48 }
  0x13   :  { %1100 = vmatpush3.msra.mxu1 %v65_v35  ;;  %1067 = vmatpush3.msra.mxu0 %v32_v36  ;;  %v60_v61 = vld [vmem:[%s2211_s1 + $0x118] sm:$0xff]  ;;  %v75_v63 = vld [vmem:[%s2211_s1 + $0x190] sm:$0xff]  ;;  %v42_v0 = vld [vmem:[%s2211_s1 + $0x88] sm:$0xff] }
  0x14   :  { %1101 = vmatprep.subr.mxu1 %v80_v37  ;;  %1068 = vmatprep.subr.mxu0 %v47_v40  ;;  %v59_v1 = vld [vmem:[%s2211_s1 + $0x110] sm:$0xff]  ;;  %v26_v2 = vld [vmem:[%s2211_s1 + $0x8] sm:$0xff]  ;;  %v41_v6 = vld [vmem:[%s2211_s1 + $0x80] sm:$0xff]  ;;  %v292_v12 = vcombine.high %v290_v5, %v290_v5 }
  0x15   :  { %1102 = vmatpush3.msra.mxu1 %v64_v41  ;;  %1069 = vmatpush3.msra.mxu0 %v31_v42  ;;  %v74_v3 = vld [vmem:[%s2211_s1 + $0x188] sm:$0xff]  ;;  %v25_v7 = vld [vmem:[%s2211_s1] sm:$0xff]  ;;  %v120_v10 = vld [vmem:[%s2211_s1 + $0x2f8] sm:$0xff] }
  0x16   :  { %1103 = vmatprep.subr.mxu1 %v79_v43  ;;  %1070 = vmatprep.subr.mxu0 %v46_v44  ;;  %v58_v8 = vld [vmem:[%s2211_s1 + $0x108] sm:$0xff]  ;;  %v73_v9 = vld [vmem:[%s2211_s1 + $0x180] sm:$0xff]  ;;  %v104_v13 = vld [vmem:[%s2211_s1 + $0x278] sm:$0xff] }
  0x17   :  { %1104 = vmatpush3.msra.mxu1 %v63_v45  ;;  %1071 = vmatpush3.msra.mxu0 %v30_v46  ;;  %v57_v11 = vld [vmem:[%s2211_s1 + $0x100] sm:$0xff]  ;;  %v119_v14 = vld [vmem:[%s2211_s1 + $0x2f0] sm:$0xff]  ;;  %v152_v15 = vld [vmem:[%s2211_s1 + $0x3f8] sm:$0xff] }
  0x18   :  { %1105 = vmatprep.subr.mxu1 %v78_v47  ;;  %1072 = vmatprep.subr.mxu0 %v45_v49  ;;  %v103_v16 = vld [vmem:[%s2211_s1 + $0x270] sm:$0xff]  ;;  %v136_v17 = vld [vmem:[%s2211_s1 + $0x378] sm:$0xff]  ;;  %v118_v18 = vld [vmem:[%s2211_s1 + $0x2e8] sm:$0xff] }
  0x19   :  { %1106 = vmatpush3.msra.mxu1 %v62_v50  ;;  %1073 = vmatpush3.msra.mxu0 %v29_v52  ;;  %v151_v19 = vld [vmem:[%s2211_s1 + $0x3f0] sm:$0xff]  ;;  %v102_v20 = vld [vmem:[%s2211_s1 + $0x268] sm:$0xff]  ;;  %v117_v22 = vld [vmem:[%s2211_s1 + $0x2e0] sm:$0xff] }
  0x1a   :  { %1107 = vmatprep.subr.mxu1 %v77_v53  ;;  %1074 = vmatprep.subr.mxu0 %v44_v54  ;;  %v135_v21 = vld [vmem:[%s2211_s1 + $0x370] sm:$0xff]  ;;  %v150_v23 = vld [vmem:[%s2211_s1 + $0x3e8] sm:$0xff]  ;;  %v101_v24 = vld [vmem:[%s2211_s1 + $0x260] sm:$0xff] }
  0x1b   :  { %1108 = vmatpush3.msra.mxu1 %v61_v55  ;;  %1075 = vmatpush3.msra.mxu0 %v28_v56  ;;  %v134_v25 = vld [vmem:[%s2211_s1 + $0x368] sm:$0xff]  ;;  %v116_v26 = vld [vmem:[%s2211_s1 + $0x2d8] sm:$0xff]  ;;  %v149_v27 = vld [vmem:[%s2211_s1 + $0x3e0] sm:$0xff] }
  0x1c   :  { %1109 = vmatprep.subr.mxu1 %v76_v57  ;;  %1076 = vmatprep.subr.mxu0 %v43_v60  ;;  %v100_v28 = vld [vmem:[%s2211_s1 + $0x258] sm:$0xff]  ;;  %v133_v29 = vld [vmem:[%s2211_s1 + $0x360] sm:$0xff]  ;;  %v115_v30 = vld [vmem:[%s2211_s1 + $0x2d0] sm:$0xff] }
  0x1d   :  { %1110 = vmatpush3.msra.mxu1 %v60_v61  ;;  %1077 = vmatpush3.msra.mxu0 %v27_v62  ;;  %v148_v31 = vld [vmem:[%s2211_s1 + $0x3d8] sm:$0xff]  ;;  %v99_v32 = vld [vmem:[%s2211_s1 + $0x250] sm:$0xff]  ;;  %v114_v34 = vld [vmem:[%s2211_s1 + $0x2c8] sm:$0xff] }
  0x1e   :  { %1111 = vmatprep.subr.mxu1 %v75_v63  ;;  %1078 = vmatprep.subr.mxu0 %v42_v0  ;;  %v132_v33 = vld [vmem:[%s2211_s1 + $0x358] sm:$0xff]  ;;  %v147_v35 = vld [vmem:[%s2211_s1 + $0x3d0] sm:$0xff]  ;;  %v98_v36 = vld [vmem:[%s2211_s1 + $0x248] sm:$0xff] }
  0x1f   :  { %1112 = vmatpush3.msra.mxu1 %v59_v1  ;;  %1079 = vmatpush3.msra.mxu0 %v26_v2  ;;  %v131_v37 = vld [vmem:[%s2211_s1 + $0x350] sm:$0xff]  ;;  %v113_v38 = vld [vmem:[%s2211_s1 + $0x2c0] sm:$0xff]  ;;  %v146_v40 = vld [vmem:[%s2211_s1 + $0x3c8] sm:$0xff] }
  0x20   :  { %1113 = vmatprep.subr.mxu1 %v74_v3  ;;  %1080 = vmatprep.subr.mxu0 %v41_v6  ;;  %v97_v41 = vld [vmem:[%s2211_s1 + $0x240] sm:$0xff]  ;;  %v130_v42 = vld [vmem:[%s2211_s1 + $0x348] sm:$0xff]  ;;  %v112_v43 = vld [vmem:[%s2211_s1 + $0x2b8] sm:$0xff] }
  0x21   :  { %422 = vmatprep.mubr.f32.mxu0 %v291_v4  ;;  %1081 = vmatpush3.msra.mxu0 %v25_v7  ;;  %v145_v44 = vld [vmem:[%s2211_s1 + $0x3c0] sm:$0xff]  ;;  %v96_v45 = vld [vmem:[%s2211_s1 + $0x238] sm:$0xff]  ;;  %v111_v47 = vld [vmem:[%s2211_s1 + $0x2b0] sm:$0xff] }
  0x22   :  { %1114 = vmatpush3.msra.mxu1 %v58_v8  ;;  %423 = vmatmul.mubr.f32.vlgmr.msra.gmra.mxu0 %v283_v58  ;;  %v129_v46 = vld [vmem:[%s2211_s1 + $0x340] sm:$0xff]  ;;  %v144_v49 = vld [vmem:[%s2211_s1 + $0x3b8] sm:$0xff]  ;;  %v95_v50 = vld [vmem:[%s2211_s1 + $0x230] sm:$0xff] }
  0x23   :  { %1115 = vmatprep.subr.mxu1 %v73_v9  ;;  %1120 = vmatprep.subr.mxu0 %v120_v10  ;;  %v128_v51 = vld [vmem:[%s2211_s1 + $0x338] sm:$0xff]  ;;  %v110_v52 = vld [vmem:[%s2211_s1 + $0x2a8] sm:$0xff]  ;;  %v143_v53 = vld [vmem:[%s2211_s1 + $0x3b0] sm:$0xff] }
  0x24   :  { %1116 = vmatpush3.msra.mxu1 %v57_v11  ;;  %492 = vmatprep.mubr.f32.mxu1 %v292_v12  ;;  %v94_v54 = vld [vmem:[%s2211_s1 + $0x228] sm:$0xff]  ;;  %v127_v55 = vld [vmem:[%s2211_s1 + $0x330] sm:$0xff]  ;;  %v109_v56 = vld [vmem:[%s2211_s1 + $0x2a0] sm:$0xff] }
  0x25   :  { %1121 = vmatpush3.msra.mxu0 %v104_v13  ;;  %493 = vmatmul.mubr.f32.vlgmr.msra.gmra.mxu1 %v290_v5  ;;  %v142_v57 = vld [vmem:[%s2211_s1 + $0x3a8] sm:$0xff]  ;;  %v93_v58 = vld [vmem:[%s2211_s1 + $0x220] sm:$0xff]  ;;  %v108_v61 = vld [vmem:[%s2211_s1 + $0x298] sm:$0xff] }
  0x26   :  { %1122 = vmatprep.subr.mxu0 %v119_v14  ;;  %1155 = vmatprep.subr.mxu1 %v152_v15  ;;  %v22_v59 = vld [vmem:[%s2210_s0 + $0x8] sm:$0xff]  ;;  %v141_v62 = vld [vmem:[%s2211_s1 + $0x3a0] sm:$0xff]  ;;  %v92_v63 = vld [vmem:[%s2211_s1 + $0x218] sm:$0xff] }
  0x27   :  { %1123 = vmatpush3.msra.mxu0 %v103_v16  ;;  %1156 = vmatpush3.msra.mxu1 %v136_v17  ;;  %v126_v60 = vld [vmem:[%s2211_s1 + $0x328] sm:$0xff]  ;;  %v125_v0 = vld [vmem:[%s2211_s1 + $0x320] sm:$0xff]  ;;  %v107_v1 = vld [vmem:[%s2211_s1 + $0x290] sm:$0xff]  ;;  %v293_v2 = vcombine.high %v22_v59, %v22_v59  ;;  %v300_v5 = vrot.slane %v22_v59, %v1560_v48 }
  0x28   :  { %1124 = vmatprep.subr.mxu0 %v118_v18  ;;  %1157 = vmatprep.subr.mxu1 %v151_v19  ;;  %v140_v3 = vld [vmem:[%s2211_s1 + $0x398] sm:$0xff]  ;;  %v91_v4 = vld [vmem:[%s2211_s1 + $0x210] sm:$0xff]  ;;  %v106_v7 = vld [vmem:[%s2211_s1 + $0x288] sm:$0xff] }
  0x29   :  { %1125 = vmatpush3.msra.mxu0 %v102_v20  ;;  %1158 = vmatpush3.msra.mxu1 %v135_v21  ;;  %v124_v6 = vld [vmem:[%s2211_s1 + $0x318] sm:$0xff]  ;;  %v139_v8 = vld [vmem:[%s2211_s1 + $0x390] sm:$0xff]  ;;  %v90_v9 = vld [vmem:[%s2211_s1 + $0x208] sm:$0xff]  ;;  %v307_v12 = vrot.slane %v293_v2, %v1560_v48  ;;  %v308_v15 = vcombine.high %v300_v5, %v300_v5 }
  0x2a   :  { %1126 = vmatprep.subr.mxu0 %v117_v22  ;;  %1159 = vmatprep.subr.mxu1 %v150_v23  ;;  %v123_v10 = vld [vmem:[%s2211_s1 + $0x310] sm:$0xff]  ;;  %v105_v11 = vld [vmem:[%s2211_s1 + $0x280] sm:$0xff]  ;;  %v138_v13 = vld [vmem:[%s2211_s1 + $0x388] sm:$0xff] }
  0x2b   :  { %1127 = vmatpush3.msra.mxu0 %v101_v24  ;;  %1160 = vmatpush3.msra.mxu1 %v134_v25  ;;  %v89_v14 = vld [vmem:[%s2211_s1 + $0x200] sm:$0xff]  ;;  %v122_v16 = vld [vmem:[%s2211_s1 + $0x308] sm:$0xff]  ;;  %v184_v18 = vld [vmem:[%s2211_s1 + $0x4f8] sm:$0xff]  ;;  %v309_v20 = vcombine.high %v307_v12, %v307_v12 }
  0x2c   :  { %1128 = vmatprep.subr.mxu0 %v116_v26  ;;  %1161 = vmatprep.subr.mxu1 %v149_v27  ;;  %v137_v17 = vld [vmem:[%s2211_s1 + $0x380] sm:$0xff]  ;;  %v168_v21 = vld [vmem:[%s2211_s1 + $0x478] sm:$0xff]  ;;  %v183_v22 = vld [vmem:[%s2211_s1 + $0x4f0] sm:$0xff] }
  0x2d   :  { %1129 = vmatpush3.msra.mxu0 %v100_v28  ;;  %1162 = vmatpush3.msra.mxu1 %v133_v29  ;;  %v121_v19 = vld [vmem:[%s2211_s1 + $0x300] sm:$0xff]  ;;  %v216_v23 = vld [vmem:[%s2211_s1 + $0x5f8] sm:$0xff]  ;;  %v167_v24 = vld [vmem:[%s2211_s1 + $0x470] sm:$0xff] }
  0x2e   :  { %1130 = vmatprep.subr.mxu0 %v115_v30  ;;  %1163 = vmatprep.subr.mxu1 %v148_v31  ;;  %v200_v25 = vld [vmem:[%s2211_s1 + $0x578] sm:$0xff]  ;;  %v182_v26 = vld [vmem:[%s2211_s1 + $0x4e8] sm:$0xff]  ;;  %v215_v27 = vld [vmem:[%s2211_s1 + $0x5f0] sm:$0xff] }
  0x2f   :  { %1131 = vmatpush3.msra.mxu0 %v99_v32  ;;  %1164 = vmatpush3.msra.mxu1 %v132_v33  ;;  %v166_v28 = vld [vmem:[%s2211_s1 + $0x468] sm:$0xff]  ;;  %v199_v29 = vld [vmem:[%s2211_s1 + $0x570] sm:$0xff]  ;;  %v181_v30 = vld [vmem:[%s2211_s1 + $0x4e0] sm:$0xff] }
  0x30   :  { %1132 = vmatprep.subr.mxu0 %v114_v34  ;;  %1165 = vmatprep.subr.mxu1 %v147_v35  ;;  %v214_v31 = vld [vmem:[%s2211_s1 + $0x5e8] sm:$0xff]  ;;  %v165_v32 = vld [vmem:[%s2211_s1 + $0x460] sm:$0xff]  ;;  %v180_v34 = vld [vmem:[%s2211_s1 + $0x4d8] sm:$0xff] }
  0x31   :  { %1133 = vmatpush3.msra.mxu0 %v98_v36  ;;  %1166 = vmatpush3.msra.mxu1 %v131_v37  ;;  %v198_v33 = vld [vmem:[%s2211_s1 + $0x568] sm:$0xff]  ;;  %v213_v35 = vld [vmem:[%s2211_s1 + $0x5e0] sm:$0xff]  ;;  %v164_v36 = vld [vmem:[%s2211_s1 + $0x458] sm:$0xff] }
  0x32   :  { %1134 = vmatprep.subr.mxu0 %v113_v38  ;;  %1167 = vmatprep.subr.mxu1 %v146_v40  ;;  %v197_v37 = vld [vmem:[%s2211_s1 + $0x560] sm:$0xff]  ;;  %v179_v38 = vld [vmem:[%s2211_s1 + $0x4d0] sm:$0xff]  ;;  %v212_v40 = vld [vmem:[%s2211_s1 + $0x5d8] sm:$0xff] }
  0x33   :  { %1135 = vmatpush3.msra.mxu0 %v97_v41  ;;  %1168 = vmatpush3.msra.mxu1 %v130_v42  ;;  %v163_v41 = vld [vmem:[%s2211_s1 + $0x450] sm:$0xff]  ;;  %v196_v42 = vld [vmem:[%s2211_s1 + $0x558] sm:$0xff] }
  0x34   :  { %1136 = vmatprep.subr.mxu0 %v112_v43  ;;  %1169 = vmatprep.subr.mxu1 %v145_v44  ;;  %v178_v43 = vld [vmem:[%s2211_s1 + $0x4c8] sm:$0xff]  ;;  %v211_v44 = vld [vmem:[%s2211_s1 + $0x5d0] sm:$0xff] }
  0x35   :  { %1137 = vmatpush3.msra.mxu0 %v96_v45  ;;  %1170 = vmatpush3.msra.mxu1 %v129_v46  ;;  %v162_v45 = vld [vmem:[%s2211_s1 + $0x448] sm:$0xff]  ;;  %v195_v46 = vld [vmem:[%s2211_s1 + $0x550] sm:$0xff] }
  0x36   :  { %1138 = vmatprep.subr.mxu0 %v111_v47  ;;  %1171 = vmatprep.subr.mxu1 %v144_v49  ;;  %v177_v47 = vld [vmem:[%s2211_s1 + $0x4c0] sm:$0xff]  ;;  %v210_v49 = vld [vmem:[%s2211_s1 + $0x5c8] sm:$0xff] }
  0x37   :  { %1139 = vmatpush3.msra.mxu0 %v95_v50  ;;  %1172 = vmatpush3.msra.mxu1 %v128_v51  ;;  %v161_v50 = vld [vmem:[%s2211_s1 + $0x440] sm:$0xff]  ;;  %v194_v51 = vld [vmem:[%s2211_s1 + $0x548] sm:$0xff] }
  0x38   :  { %1140 = vmatprep.subr.mxu0 %v110_v52  ;;  %1173 = vmatprep.subr.mxu1 %v143_v53  ;;  %v176_v52 = vld [vmem:[%s2211_s1 + $0x4b8] sm:$0xff] }
  0x39   :  { %1141 = vmatpush3.msra.mxu0 %v94_v54  ;;  %1174 = vmatpush3.msra.mxu1 %v127_v55 }
  0x3a   :  { %1142 = vmatprep.subr.mxu0 %v109_v56  ;;  %1175 = vmatprep.subr.mxu1 %v142_v57 }
  0x3b   :  { %1143 = vmatpush3.msra.mxu0 %v93_v58  ;;  %1176 = vmatpush3.msra.mxu1 %v126_v60 }
  0x3c   :  { %1144 = vmatprep.subr.mxu0 %v108_v61  ;;  %1177 = vmatprep.subr.mxu1 %v141_v62 }
  0x3d   :  { %1145 = vmatpush3.msra.mxu0 %v92_v63  ;;  %1178 = vmatpush3.msra.mxu1 %v125_v0 }
  0x3e   :  { %1146 = vmatprep.subr.mxu0 %v107_v1  ;;  %1179 = vmatprep.subr.mxu1 %v140_v3 }
  0x3f   :  { %1147 = vmatpush3.msra.mxu0 %v91_v4  ;;  %1180 = vmatpush3.msra.mxu1 %v124_v6 }
  0x40   :  { %1148 = vmatprep.subr.mxu0 %v106_v7  ;;  %1181 = vmatprep.subr.mxu1 %v139_v8 }
  0x41   :  { %1149 = vmatpush3.msra.mxu0 %v90_v9  ;;  %1182 = vmatpush3.msra.mxu1 %v123_v10 }
  0x42   :  { %1150 = vmatprep.subr.mxu0 %v105_v11  ;;  %1183 = vmatprep.subr.mxu1 %v138_v13 }
  0x43   :  { %1151 = vmatpush3.msra.mxu0 %v89_v14  ;;  %562 = vmatprep.mubr.f32.mxu0 %v308_v15 }
  0x44   :  { %1184 = vmatpush3.msra.mxu1 %v122_v16  ;;  %563 = vmatmul.mubr.f32.vlgmr.msra.gmra.mxu0 %v300_v5 }
  0x45   :  { %1185 = vmatprep.subr.mxu1 %v137_v17  ;;  %1190 = vmatprep.subr.mxu0 %v184_v18 }
  0x46   :  { %1186 = vmatpush3.msra.mxu1 %v121_v19  ;;  %632 = vmatprep.mubr.f32.mxu1 %v309_v20 }
  0x47   :  { %1191 = vmatpush3.msra.mxu0 %v168_v21  ;;  %633 = vmatmul.mubr.f32.vlgmr.msra.gmra.mxu1 %v307_v12 }
  0x48   :  { %1192 = vmatprep.subr.mxu0 %v183_v22  ;;  %1225 = vmatprep.subr.mxu1 %v216_v23 }
  0x49   :  { %1193 = vmatpush3.msra.mxu0 %v167_v24  ;;  %1226 = vmatpush3.msra.mxu1 %v200_v25 }
  0x4a   :  { %1194 = vmatprep.subr.mxu0 %v182_v26  ;;  %1227 = vmatprep.subr.mxu1 %v215_v27 }
  0x4b   :  { %1195 = vmatpush3.msra.mxu0 %v166_v28  ;;  %1228 = vmatpush3.msra.mxu1 %v199_v29 }
  0x4c   :  { %1196 = vmatprep.subr.mxu0 %v181_v30  ;;  %1229 = vmatprep.subr.mxu1 %v214_v31 }
  0x4d   :  { %1197 = vmatpush3.msra.mxu0 %v165_v32  ;;  %1230 = vmatpush3.msra.mxu1 %v198_v33 }
  0x4e   :  { %1198 = vmatprep.subr.mxu0 %v180_v34  ;;  %1231 = vmatprep.subr.mxu1 %v213_v35 }
  0x4f   :  { %1199 = vmatpush3.msra.mxu0 %v164_v36  ;;  %1232 = vmatpush3.msra.mxu1 %v197_v37 }
  0x50   :  { %1200 = vmatprep.subr.mxu0 %v179_v38  ;;  %1233 = vmatprep.subr.mxu1 %v212_v40 }
  0x51   :  { %1201 = vmatpush3.msra.mxu0 %v163_v41  ;;  %1234 = vmatpush3.msra.mxu1 %v196_v42 }
  0x52   :  { %1202 = vmatprep.subr.mxu0 %v178_v43  ;;  %1235 = vmatprep.subr.mxu1 %v211_v44 }
  0x53   :  { %1203 = vmatpush3.msra.mxu0 %v162_v45 }
  0x54   :  { %10 = vsyncpa [#allocation3], 0  ;;  %1236 = vmatpush3.msra.mxu1 %v195_v46  ;;  %1204 = vmatprep.subr.mxu0 %v177_v47  ;;  %v209_v53 = vld [vmem:[%s2211_s1 + $0x5c0] sm:$0xff]  ;;  %v160_v54 = vld [vmem:[%s2211_s1 + $0x438] sm:$0xff]  ;;  %v1392_v35 = vmov 0.0   ;;  %vm1393_vm0 = vmmov 0  }
  0x55   :  { %1237 = vmatprep.subr.mxu1 %v210_v49  ;;  %1205 = vmatpush3.msra.mxu0 %v161_v50  ;;  %v193_v55 = vld [vmem:[%s2211_s1 + $0x540] sm:$0xff]  ;;  %v175_v56 = vld [vmem:[%s2211_s1 + $0x4b0] sm:$0xff]  ;;  %v208_v57 = vld [vmem:[%s2211_s1 + $0x5b8] sm:$0xff]  ;;  %vm927_vm1 = vcmask 64512   ;;  %s1397_s10 = smov [#allocation2]  }
  0x56   :  { %1238 = vmatpush3.msra.mxu1 %v194_v51  ;;  %1206 = vmatprep.subr.mxu0 %v176_v52  ;;  %v159_v58 = vld [vmem:[%s2211_s1 + $0x430] sm:$0xff]  ;;  %v192_v59 = vld [vmem:[%s2211_s1 + $0x538] sm:$0xff]  ;;  %v174_v60 = vld [vmem:[%s2211_s1 + $0x4a8] sm:$0xff]  ;;  %s1040_s11 = sshll.u32 %s1397_s10, 4  ;;  %s1041_s11 = int_to_ptr.vmem [resolvable:$true] %s1040_s11 }
  0x57   :  { %1239 = vmatprep.subr.mxu1 %v209_v53  ;;  %1207 = vmatpush3.msra.mxu0 %v160_v54  ;;  %v207_v61 = vld [vmem:[%s2211_s1 + $0x5b0] sm:$0xff]  ;;  %v158_v62 = vld [vmem:[%s2211_s1 + $0x428] sm:$0xff]  ;;  %v173_v0 = vld [vmem:[%s2211_s1 + $0x4a0] sm:$0xff]  ;;  %s1369_s12 = scalar_lea.vmem %s1041_s11, 32  ;;  %p1374_p1 = scmp.lt.s32.totalorder %s1041_s11, %s1041_s11 }
  0x58   :  { %1240 = vmatpush3.msra.mxu1 %v193_v55  ;;  %1208 = vmatprep.subr.mxu0 %v175_v56  ;;  %v191_v63 = vld [vmem:[%s2211_s1 + $0x530] sm:$0xff]  ;;  %v206_v1 = vld [vmem:[%s2211_s1 + $0x5a8] sm:$0xff]  ;;  %v157_v2 = vld [vmem:[%s2211_s1 + $0x420] sm:$0xff]  ;;  %p1370_p0 = scmp.ne.s32.totalorder %s1041_s11, %s1369_s12  ;;  %p1375_p2 = scmp.lt.s32.totalorder %s1369_s12, %s1369_s12 }
  0x59   :  { %1241 = vmatprep.subr.mxu1 %v208_v57  ;;  %1209 = vmatpush3.msra.mxu0 %v159_v58  ;;  %v23_v3 = vld [vmem:[%s2210_s0 + $0x10] sm:$0xff]  ;;  %v190_v4 = vld [vmem:[%s2211_s1 + $0x528] sm:$0xff]  ;;  %v172_v5 = vld [vmem:[%s2211_s1 + $0x498] sm:$0xff] }
  0x5a   :  { %1242 = vmatpush3.msra.mxu1 %v192_v59  ;;  %1210 = vmatprep.subr.mxu0 %v174_v60  ;;  %v205_v6 = vld [vmem:[%s2211_s1 + $0x5a0] sm:$0xff]  ;;  %v156_v7 = vld [vmem:[%s2211_s1 + $0x418] sm:$0xff]  ;;  %v171_v9 = vld [vmem:[%s2211_s1 + $0x490] sm:$0xff]  ;;  %v310_v10 = vcombine.high %v23_v3, %v23_v3  ;;  %v317_v13 = vrot.slane %v23_v3, %v1560_v48  ;;  %p1376_p3 = por %p1375_p2, %p1374_p1 }
  0x5b   :  { %1243 = vmatprep.subr.mxu1 %v207_v61  ;;  %1211 = vmatpush3.msra.mxu0 %v158_v62  ;;  %v189_v8 = vld [vmem:[%s2211_s1 + $0x520] sm:$0xff]  ;;  %v204_v11 = vld [vmem:[%s2211_s1 + $0x598] sm:$0xff]  ;;  %v155_v12 = vld [vmem:[%s2211_s1 + $0x410] sm:$0xff] }
  0x5c   :  { %1244 = vmatpush3.msra.mxu1 %v191_v63  ;;  %1212 = vmatprep.subr.mxu0 %v173_v0  ;;  %v188_v14 = vld [vmem:[%s2211_s1 + $0x518] sm:$0xff]  ;;  %v170_v15 = vld [vmem:[%s2211_s1 + $0x488] sm:$0xff]  ;;  %v203_v16 = vld [vmem:[%s2211_s1 + $0x590] sm:$0xff]  ;;  %v324_v20 = vrot.slane %v310_v10, %v1560_v48  ;;  %v325_v23 = vcombine.high %v317_v13, %v317_v13  ;;  %p1377_p4 = pnand %p1376_p3, %p1370_p0 }
  0x5d   :  { %1245 = vmatprep.subr.mxu1 %v206_v1  ;;  %1213 = vmatpush3.msra.mxu0 %v157_v2  ;;  %v154_v17 = vld [vmem:[%s2211_s1 + $0x408] sm:$0xff]  ;;  %v187_v18 = vld [vmem:[%s2211_s1 + $0x510] sm:$0xff]  ;;  %v169_v19 = vld [vmem:[%s2211_s1 + $0x480] sm:$0xff] }
  0x5e   :  { %1246 = vmatpush3.msra.mxu1 %v190_v4  ;;  %1214 = vmatprep.subr.mxu0 %v172_v5  ;;  %v202_v21 = vld [vmem:[%s2211_s1 + $0x588] sm:$0xff]  ;;  %v153_v22 = vld [vmem:[%s2211_s1 + $0x400] sm:$0xff]  ;;  %v248_v26 = vld [vmem:[%s2211_s1 + $0x6f8] sm:$0xff]  ;;  %v326_v28 = vcombine.high %v324_v20, %v324_v20 }
  0x5f   :  { %1247 = vmatprep.subr.mxu1 %v205_v6  ;;  %1215 = vmatpush3.msra.mxu0 %v156_v7  ;;  %v186_v24 = vld [vmem:[%s2211_s1 + $0x508] sm:$0xff]  ;;  %v201_v25 = vld [vmem:[%s2211_s1 + $0x580] sm:$0xff]  ;;  %v232_v29 = vld [vmem:[%s2211_s1 + $0x678] sm:$0xff] }
  0x60   :  { %1248 = vmatpush3.msra.mxu1 %v189_v8  ;;  %1216 = vmatprep.subr.mxu0 %v171_v9  ;;  %v185_v27 = vld [vmem:[%s2211_s1 + $0x500] sm:$0xff]  ;;  %v247_v30 = vld [vmem:[%s2211_s1 + $0x6f0] sm:$0xff]  ;;  %v246_v32 = vld [vmem:[%s2211_s1 + $0x6e8] sm:$0xff] }
  0x61   :  { %1249 = vmatprep.subr.mxu1 %v204_v11  ;;  %1217 = vmatpush3.msra.mxu0 %v155_v12  ;;  %v231_v31 = vld [vmem:[%s2211_s1 + $0x670] sm:$0xff]  ;;  %v264_v33 = vld [vmem:[%s2211_s1 + $0x778] sm:$0xff]  ;;  %v230_v34 = vld [vmem:[%s2211_s1 + $0x668] sm:$0xff] }
  0x62   :  { %1250 = vmatpush3.msra.mxu1 %v188_v14  ;;  %1218 = vmatprep.subr.mxu0 %v170_v15  ;;  %v245_v36 = vld [vmem:[%s2211_s1 + $0x6e0] sm:$0xff]  ;;  %v263_v37 = vld [vmem:[%s2211_s1 + $0x770] sm:$0xff]  ;;  %v244_v40 = vld [vmem:[%s2211_s1 + $0x6d8] sm:$0xff] }
  0x63   :  { %1251 = vmatprep.subr.mxu1 %v203_v16  ;;  %1219 = vmatpush3.msra.mxu0 %v154_v17  ;;  %v229_v38 = vld [vmem:[%s2211_s1 + $0x660] sm:$0xff]  ;;  %v262_v41 = vld [vmem:[%s2211_s1 + $0x768] sm:$0xff]  ;;  %v228_v42 = vld [vmem:[%s2211_s1 + $0x658] sm:$0xff] }
  0x64   :  { %1252 = vmatpush3.msra.mxu1 %v187_v18  ;;  %1220 = vmatprep.subr.mxu0 %v169_v19  ;;  %v243_v43 = vld [vmem:[%s2211_s1 + $0x6d0] sm:$0xff]  ;;  %v261_v44 = vld [vmem:[%s2211_s1 + $0x760] sm:$0xff]  ;;  %v242_v46 = vld [vmem:[%s2211_s1 + $0x6c8] sm:$0xff] }
  0x65   :  { %1253 = vmatprep.subr.mxu1 %v202_v21  ;;  %1221 = vmatpush3.msra.mxu0 %v153_v22  ;;  %v227_v45 = vld [vmem:[%s2211_s1 + $0x650] sm:$0xff]  ;;  %v260_v47 = vld [vmem:[%s2211_s1 + $0x758] sm:$0xff]  ;;  %v226_v49 = vld [vmem:[%s2211_s1 + $0x648] sm:$0xff]  ;;  %v1394_v21 = vmov 0  }
  0x66   :  { %702 = vmatprep.mubr.f32.mxu0 %v325_v23  ;;  %1254 = vmatpush3.msra.mxu1 %v186_v24  ;;  %v241_v50 = vld [vmem:[%s2211_s1 + $0x6c0] sm:$0xff]  ;;  %v259_v51 = vld [vmem:[%s2211_s1 + $0x750] sm:$0xff]  ;;  %v240_v53 = vld [vmem:[%s2211_s1 + $0x6b8] sm:$0xff] }
  0x67   :  { %703 = vmatmul.mubr.f32.vlgmr.msra.gmra.mxu0 %v317_v13  ;;  %1255 = vmatprep.subr.mxu1 %v201_v25  ;;  %v225_v52 = vld [vmem:[%s2211_s1 + $0x640] sm:$0xff]  ;;  %v258_v54 = vld [vmem:[%s2211_s1 + $0x748] sm:$0xff]  ;;  %v224_v55 = vld [vmem:[%s2211_s1 + $0x638] sm:$0xff] }
  0x68   :  { %1260 = vmatprep.subr.mxu0 %v248_v26  ;;  %1256 = vmatpush3.msra.mxu1 %v185_v27  ;;  %v239_v56 = vld [vmem:[%s2211_s1 + $0x6b0] sm:$0xff]  ;;  %v257_v57 = vld [vmem:[%s2211_s1 + $0x740] sm:$0xff]  ;;  %v238_v59 = vld [vmem:[%s2211_s1 + $0x6a8] sm:$0xff] }
  0x69   :  { %772 = vmatprep.mubr.f32.mxu1 %v326_v28  ;;  %1261 = vmatpush3.msra.mxu0 %v232_v29  ;;  %v223_v58 = vld [vmem:[%s2211_s1 + $0x630] sm:$0xff]  ;;  %v256_v60 = vld [vmem:[%s2211_s1 + $0x738] sm:$0xff]  ;;  %v222_v61 = vld [vmem:[%s2211_s1 + $0x628] sm:$0xff] }
  0x6a   :  { %773 = vmatmul.mubr.f32.vlgmr.msra.gmra.mxu1 %v324_v20  ;;  %1262 = vmatprep.subr.mxu0 %v247_v30  ;;  %v237_v62 = vld [vmem:[%s2211_s1 + $0x6a0] sm:$0xff]  ;;  %v255_v63 = vld [vmem:[%s2211_s1 + $0x730] sm:$0xff]  ;;  %v24_v0 = vld [vmem:[%s2210_s0 + $0x18] sm:$0x3f] }
  0x6b   :  { %1263 = vmatpush3.msra.mxu0 %v231_v31  ;;  %1314 = vmatprep.subr.mxu1 %v1392_v35  ;;  %v221_v1 = vld [vmem:[%s2211_s1 + $0x620] sm:$0xff]  ;;  %v236_v2 = vld [vmem:[%s2211_s1 + $0x698] sm:$0xff]  ;;  %v254_v3 = vld [vmem:[%s2211_s1 + $0x728] sm:$0xff]  ;;  %v334_v5 = vrot.slane %v24_v0, %v1560_v48  ;;  %v327_v15 = vcombine.high %v24_v0, %v24_v0 }
  0x6c   :  { %1264 = vmatprep.subr.mxu0 %v246_v32  ;;  %1315 = vmatpush3.msra.mxu1 %v264_v33  ;;  %v220_v4 = vld [vmem:[%s2211_s1 + $0x618] sm:$0xff]  ;;  %v235_v6 = vld [vmem:[%s2211_s1 + $0x690] sm:$0xff]  ;;  %v253_v7 = vld [vmem:[%s2211_s1 + $0x720] sm:$0xff] }
  0x6d   :  { %1265 = vmatpush3.msra.mxu0 %v230_v34  ;;  %1316 = vmatprep.subr.mxu1 %v1392_v35  ;;  %v219_v8 = vld [vmem:[%s2211_s1 + $0x610] sm:$0xff]  ;;  %v234_v9 = vld [vmem:[%s2211_s1 + $0x688] sm:$0xff]  ;;  %v252_v10 = vld [vmem:[%s2211_s1 + $0x718] sm:$0xff]  ;;  %v342_v12 = vcombine.high %v334_v5, %v334_v5  ;;  %v341_v19 = vrot.slane %v327_v15, %v1560_v48 }
  0x6e   :  { %1266 = vmatprep.subr.mxu0 %v245_v36  ;;  %1317 = vmatpush3.msra.mxu1 %v263_v37  ;;  %v218_v11 = vld [vmem:[%s2211_s1 + $0x608] sm:$0xff]  ;;  %v233_v13 = vld [vmem:[%s2211_s1 + $0x680] sm:$0xff]  ;;  %v251_v16 = vld [vmem:[%s2211_s1 + $0x710] sm:$0xff] }
  0x6f   :  { %1267 = vmatpush3.msra.mxu0 %v229_v38  ;;  %1318 = vmatprep.subr.mxu1 %v1392_v35  ;;  %v217_v14 = vld [vmem:[%s2211_s1 + $0x600] sm:$0xff]  ;;  %v250_v17 = vld [vmem:[%s2211_s1 + $0x708] sm:$0xff] }
  0x70   :  { %1268 = vmatprep.subr.mxu0 %v244_v40  ;;  %1319 = vmatpush3.msra.mxu1 %v262_v41  ;;  %v249_v18 = vld [vmem:[%s2211_s1 + $0x700] sm:$0xff]  ;;  %v926_v0 = vld [vmem:[%s2214_s4 + $0x8] sm:$0xff] }
  0x71   :  { %1269 = vmatpush3.msra.mxu0 %v228_v42  ;;  %1320 = vmatprep.subr.mxu1 %v1392_v35  ;;  %v925_v20 = vld [vmem:[%s2214_s4] sm:$0xff] }
  0x72   :  { %1270 = vmatprep.subr.mxu0 %v243_v43  ;;  %1321 = vmatpush3.msra.mxu1 %v261_v44  ;;  %v918_v48 = vld [vmem:[%s2213_s3] sm:$0x3] }
  0x73   :  { %1271 = vmatpush3.msra.mxu0 %v227_v45  ;;  %1322 = vmatprep.subr.mxu1 %v1392_v35  ;;  %v1048_v27 = vld [vmem:[%s2212_s2] ss:$0 sm:$0xff]  ;;  %s1396_s2 = smov 6  }
  0x74   :  { %1272 = vmatprep.subr.mxu0 %v242_v46  ;;  %1323 = vmatpush3.msra.mxu1 %v260_v47  ;;  %v1395_v47 = vmov 6  }
  0x75   :  { %1273 = vmatpush3.msra.mxu0 %v226_v49  ;;  %1324 = vmatprep.subr.mxu1 %v1392_v35 }
  0x76   :  { %1274 = vmatprep.subr.mxu0 %v241_v50  ;;  %1325 = vmatpush3.msra.mxu1 %v259_v51 }
  0x77   :  { %1275 = vmatpush3.msra.mxu0 %v225_v52  ;;  %1326 = vmatprep.subr.mxu1 %v1392_v35 }
  0x78   :  { %1276 = vmatprep.subr.mxu0 %v240_v53  ;;  %1327 = vmatpush3.msra.mxu1 %v258_v54 }
  0x79   :  { %1277 = vmatpush3.msra.mxu0 %v224_v55  ;;  %1328 = vmatprep.subr.mxu1 %v1392_v35 }
  0x7a   :  { %1278 = vmatprep.subr.mxu0 %v239_v56  ;;  %1329 = vmatpush3.msra.mxu1 %v257_v57 }
  0x7b   :  { %1279 = vmatpush3.msra.mxu0 %v223_v58  ;;  %1330 = vmatprep.subr.mxu1 %v1392_v35 }
  0x7c   :  { %1280 = vmatprep.subr.mxu0 %v238_v59  ;;  %1331 = vmatpush3.msra.mxu1 %v256_v60 }
  0x7d   :  { %1281 = vmatpush3.msra.mxu0 %v222_v61  ;;  %1332 = vmatprep.subr.mxu1 %v1392_v35 }
  0x7e   :  { %1282 = vmatprep.subr.mxu0 %v237_v62  ;;  %1333 = vmatpush3.msra.mxu1 %v255_v63  ;;  %v1017_v62 = vsub.s32 1, %v1533_v39  ;;  %v1007_v63 = vsub.s32 0, %v1533_v39 }
  0x7f   :  { %1283 = vmatpush3.msra.mxu0 %v221_v1  ;;  %1334 = vmatprep.subr.mxu1 %v1392_v35 }
  0x80   :  { %1284 = vmatprep.subr.mxu0 %v236_v2  ;;  %1335 = vmatpush3.msra.mxu1 %v254_v3  ;;  %v1018_v1 = vrot.slane %v926_v0, %v1017_v62  ;;  %v1008_v2 = vrot.slane %v926_v0, %v1007_v63 }
  0x81   :  { %1285 = vmatpush3.msra.mxu0 %v220_v4  ;;  %1336 = vmatprep.subr.mxu1 %v1392_v35 }
  0x82   :  { %1286 = vmatprep.subr.mxu0 %v235_v6  ;;  %1337 = vmatpush3.msra.mxu1 %v253_v7  ;;  %v1023_v7 = vsub.s32 2, %v1533_v39 }
  0x83   :  { %1287 = vmatpush3.msra.mxu0 %v219_v8  ;;  %1338 = vmatprep.subr.mxu1 %v1392_v35 }
  0x84   :  { %1288 = vmatprep.subr.mxu0 %v234_v9  ;;  %1339 = vmatpush3.msra.mxu1 %v252_v10  ;;  %v1024_v9 = vrot.slane %v926_v0, %v1023_v7 }
  0x85   :  { %1289 = vmatpush3.msra.mxu0 %v218_v11  ;;  %1340 = vmatprep.subr.mxu1 %v1392_v35 }
  0x86   :  { %1290 = vmatprep.subr.mxu0 %v233_v13  ;;  %842 = vmatprep.mubr.f32.mxu0 %v342_v12 }
  0x87   :  { %1291 = vmatpush3.msra.mxu0 %v217_v14  ;;  %1341 = vmatpush3.msra.mxu1 %v251_v16 }
  0x88   :  { %843 = vmatmul.mubr.f32.vlgmr.msra.gmra.mxu0 %v334_v5  ;;  %1342 = vmatprep.subr.mxu1 %v1392_v35 }
  0x89   :  { %1343 = vmatpush3.msra.mxu1 %v250_v17  ;;  %1346 = vmatprep.mubr.msk.f32.mxu1 %vm1393_vm0, %v1392_v35 }
  0x8a   :  { %1344 = vmatprep.subr.mxu1 %v1392_v35  ;;  %1349 = vmatprep.subr.mxu0 %v1392_v35 }
  0x8b   :  { %1345 = vmatpush3.msra.mxu1 %v249_v18  ;;  %1351 = vmatprep.mubr.msk.f32.mxu0 %vm1393_vm0, %v1392_v35 }
  0x8c   :  { %1347 = vmatmul.mubr.f32.vlgmr.msra.gmra.mxu1 %v341_v19  ;;  %1350 = vmatpush3.msra.mxu0 %v925_v20 }
  0x8d   :  { %1362 = vset.pattern.permute.xlu1 %v1394_v21  ;;  %1361 = vset.pattern.permute.xlu0 %v1394_v21 }
  0x8e   :  { %1012 = vperm.xlu1 %1362, %v918_v48  }
  0x92   :  { %1363 = vset.pattern.permute.xlu1 %v1395_v47 }
  0xe2   :  { %v1082_v22 = vpop.f32.mrf.mxu0 }
  0xe4   :  { %v1083_v23 = vpop.f32.mrf.mxu0 }
  0xe5   :  { %v1117_v24 = vpop.f32.mrf.mxu1  ;;  %v1084_v26 = vadd.f32 %v1083_v23, %v1082_v22 }
  0xe7   :  { %v1118_v28 = vpop.f32.mrf.mxu1  ;;  %v425_v31 = vadd.f32 %v1084_v26, %v1048_v27 }
  0xe8   :  { %v1119_v32 = vadd.f32 %v1118_v28, %v1117_v24 }
  0xea   :  { %v495_v36 = vadd.f32 %v1119_v32, %v425_v31 }
 0x104   :  { %v1152_v25 = vpop.f32.mrf.mxu0 }
 0x106   :  { %v1153_v29 = vpop.f32.mrf.mxu0 }
 0x107   :  { %v1187_v30 = vpop.f32.mrf.mxu1  ;;  %v1154_v34 = vadd.f32 %v1153_v29, %v1152_v25 }
 0x109   :  { %v1188_v35 = vpop.f32.mrf.mxu1  ;;  %v565_v40 = vadd.f32 %v1154_v34, %v495_v36  ;;  %v1013_v3 = vpop.permute.xlu1 %1012 }
 0x10a   :  { %v1189_v41 = vadd.f32 %v1188_v35, %v1187_v30  ;;  %v1019_v5 = vmul.f32 %v1018_v1, %v1013_v3 }
 0x10c   :  { %v635_v44 = vadd.f32 %v1189_v41, %v565_v40 }
 0x127   :  { %v1222_v33 = vpop.f32.mrf.mxu0 }
 0x129   :  { %v1223_v37 = vpop.f32.mrf.mxu0 }
 0x12a   :  { %v1257_v38 = vpop.f32.mrf.mxu1  ;;  %v1224_v42 = vadd.f32 %v1223_v37, %v1222_v33 }
 0x12c   :  { %v1258_v43 = vpop.f32.mrf.mxu1  ;;  %v705_v45 = vadd.f32 %v1224_v42, %v635_v44 }
 0x12d   :  { %v1259_v46 = vadd.f32 %v1258_v43, %v1257_v38 }
 0x12f   :  { %v775_v51 = vadd.f32 %v1259_v46, %v705_v45 }
 0x148   :  { %v1292_v49 = vpop.f32.mrf.mxu0 }
 0x14a   :  { %v1293_v50 = vpop.f32.mrf.mxu0 }
 0x14b   :  { %v1294_v52 = vadd.f32 %v1293_v50, %v1292_v49 }
 0x14c   :  { %v914_v53 = vpop.f32.mrf.mxu1 }
 0x14d   :  { %v845_v54 = vadd.f32 %v1294_v52, %v775_v51 }
 0x14e   :  { %v1348_v55 = vpop.f32.mrf.mxu1 }
 0x14f   :  { %v915_v56 = vadd.f32 %v914_v53, %v845_v54 }
 0x151   :  { %1352 = vmatmul.mubr.msk.f32.vlgmr.msra.gmra.mxu0 %vm927_vm1, %v915_v56  ;;  %v919_v57 = vsub.f32 %v915_v56, %v918_v48 }
 0x153   :  { %921 = vrot.lane.b32.xlu0 %v919_v57, %s1396_s2 }
 0x157   :  { %1002 = vperm.xlu0 %1361, %v915_v56  }
 0x15b   :  { %1364 = vset.pattern.permute.xlu0 %v1395_v47 }
 0x1c5   :  { %v922_v58 = vpop.permute.xlu0 %921 }
 0x1c6   :  { %v924_v59 = vmul.f32 %v922_v58, %v915_v56 }
 0x1c8   :  { %1028 = vperm.xlu1 %1363, %v924_v59  }
 0x1d2   :  { %v1003_v4 = vpop.permute.xlu0 %1002 }
 0x1d3   :  { %v1009_v6 = vmul.f32 %v1008_v2, %v1003_v4 }
 0x1d5   :  { %v1020_v8 = vadd.f32 %v1019_v5, %v1009_v6 }
 0x1d7   :  { %v1025_v12 = vadd.f32 %v1024_v9, %v1020_v8 }
 0x211   :  { %v997_v60 = vpop.f32.mrf.mxu0 }
 0x213   :  { %v1353_v61 = vpop.f32.mrf.mxu0 }
 0x243   :  { %v1029_v10 = vpop.permute.xlu1 %1028 }
 0x244   :  { %v1031_v11 = vmul.f32 %v1029_v10, %v997_v60 }
 0x246   :  { %v1032_v13 = vadd.f32 %v1031_v11, %v1025_v12 }
 0x248   :  { %1033 = vst [vmem:[#allocation2] sm:$0x3] %v1032_v13 }
 0x249   :  { %1380 = shalt.err (!%p1377_p4)
}
 0x24a   :  { %1043 = dma.vmem_to_hbm [thread:$0]  %s1041_s11, 32, %s2215_s5, [#allocation3]  }
 0x24b   :  { %1389 = dma.done.wait [#allocation3], 32  }
 0x24c   :  { %1390 = vsyncadd [#allocation3], 4294967264 }
 0x24d   :  { %1047 = vsyncpa [#allocation3], 1 }

</bundles_post_ra>
